<compile_context>
chip_gen: v6e
topology: v6e:2x2x1
jax: 0.10.0
libtpu: 0.0.40
codegen_flags: <defaults>
</compile_context>

<pallas_src>
import jax
import jax.numpy as jnp
from jax.experimental import pallas as pl
from jax.experimental.pallas import tpu as pltpu

_MIB = 1024 * 1024


def _weightnet_kernel(x_ref, w_ref, b_ref, o_ref):
    # x_ref: (Nb, C*T)   flattened input rows (native layout, contiguous)
    # w_ref: (C*T, T*G)  banded conv weight (taps / shifts / padding baked in)
    # b_ref: (1, T*G)    f32 bias tiled over t  (b_flat[t*G + g] = bias[g])
    # o_ref: (Nb, T*G)   2*sigmoid(conv1d(x)) in (t, g) column order
    acc = jnp.dot(x_ref[...], w_ref[...], preferred_element_type=jnp.float32)
    acc = acc + b_ref[...]
    o_ref[...] = (2.0 * jax.nn.sigmoid(acc)).astype(o_ref.dtype)


def _round_up(v, m):
    return (v + m - 1) // m * m


def _tpu_vmem_and_cores():
    """(per-core VMEM bytes, assumed TensorCores per chip)."""
    try:
        vmem = int(pltpu.get_tpu_info().vmem_capacity_bytes)
    except Exception:
        vmem = 64 * _MIB  # conservative (v7x-like) fallback
    # v7x: 64 MiB VMEM per TC, 2 TCs/chip.  v5e/v6e: 128 MiB, 1 TC.
    num_cores = 2 if vmem <= 64 * _MIB else 1
    return vmem, num_cores


def _pick_batch_block(n, ct, tg, itemsize, budget_bytes, num_cores):
    """Rows per grid step: biggest multiple of 8 fitting the VMEM budget,
    capped so a 2-TC chip (v7x) still gets >= 2 grid blocks."""
    lane_x = _round_up(ct, 128)
    lane_o = _round_up(tg, 128)
    # Grid-invariant buffers (weight + bias); counted double-buffered to be safe.
    fixed = 2 * _round_up(ct, 8) * lane_o * itemsize + 2 * 8 * lane_o * 4
    # Per batch row: double-buffered x + out blocks, plus the f32 accumulator.
    per_row = 2 * lane_x * itemsize + 2 * lane_o * itemsize + lane_o * 4
    avail = max(budget_bytes - fixed, 8 * per_row)
    nb = min(avail // per_row, 4096)
    if num_cores > 1 and n > num_cores:      # keep work for both v7x TCs
        nb = min(nb, pl.cdiv(n, num_cores))
    nb = min(nb, _round_up(n, 8))
    nb = max(8, (int(nb) // 8) * 8)
    est_bytes = fixed + nb * per_row
    return nb, est_bytes


def _build_banded_weight(weight, t, dtype):
    """(G, C, 3) conv weight -> (C*T, T*G) banded matrix with the +-1 time
    shifts and zero padding of conv1d(padding=1) baked in.

    W_big[c*T + t_in, t_out*G + g] = W[g, c, t_in - t_out + 1] (0 outside taps).
    """
    g, c, _ = weight.shape
    # S[k, t_in, t_out] = 1 iff t_in == t_out + k - 1 (tap k reads x[t_out+k-1]).
    shifts = jnp.stack([jnp.eye(t, k=1 - k, dtype=jnp.float32) for k in range(3)])
    big = jnp.einsum('gck,kio->ciog', weight.astype(jnp.float32), shifts)
    return big.reshape(c * t, t * g).astype(dtype)


def weightnet_forward(x, weight, bias):
    """x: (N, C_in, T); weight: (G, C_in, 3); bias: (G,).

    Returns (N, T, G) = 2*sigmoid(conv1d(x, weight, bias, padding=1)).permute(0,2,1)
    """
    n, c, t = x.shape
    g = weight.shape[0]
    ct, tg = c * t, t * g
    itemsize = jnp.dtype(x.dtype).itemsize

    vmem_cap, num_cores = _tpu_vmem_and_cores()
    budget = min(vmem_cap // 3, 48 * _MIB)
    nb, est_bytes = _pick_batch_block(n, ct, tg, itemsize, budget, num_cores)

    # Tiny parameter reshuffles only (KB-scale); x itself is only reshaped
    # (free, contiguous) and zero-padded along N if needed.
    w_big = _build_banded_weight(weight, t, x.dtype)               # (C*T, T*G)
    b_flat = jnp.tile(bias.astype(jnp.float32), t).reshape(1, tg)  # (1, T*G)

    x_flat = x.reshape(n, ct)
    n_pad = _round_up(n, nb)
    if n_pad != n:
        x_flat = jnp.pad(x_flat, ((0, n_pad - n), (0, 0)))

    vmem_limit = int(min(vmem_cap - 2 * _MIB, max(2 * est_bytes, 24 * _MIB)))

    out_flat = pl.pallas_call(
        _weightnet_kernel,
        out_shape=jax.ShapeDtypeStruct((n_pad, tg), x.dtype),
        grid_spec=pltpu.PrefetchScalarGridSpec(
            num_scalar_prefetch=0,
            grid=(n_pad // nb,),
            in_specs=[
                pl.BlockSpec((nb, ct), lambda i: (i, 0)),   # x rows (lane-dense)
                pl.BlockSpec((ct, tg), lambda i: (0, 0)),   # weight: grid-invariant
                pl.BlockSpec((1, tg), lambda i: (0, 0)),    # bias: grid-invariant
            ],
            out_specs=pl.BlockSpec((nb, tg), lambda i: (i, 0)),
        ),
        compiler_params=pltpu.CompilerParams(
            dimension_semantics=("parallel",),
            vmem_limit_bytes=vmem_limit,
        ),
    )(x_flat, w_big, b_flat)

    # Columns are already in (t, g) order -> the permute(0,2,1) is a free reshape.
    return out_flat[:n].reshape(n, t, g)


def _reference(x, weight, bias):
    # Pure-JAX reference of the PyTorch forward (silent correctness check).
    y = jax.lax.conv_general_dilated(
        x, weight,
        window_strides=(1,), padding=((1, 1),),
        dimension_numbers=("NCH", "OIH", "NCH"),
    )
    y = y + bias[None, :, None]
    y = jnp.transpose(y, (0, 2, 1))
    return 2.0 * jax.nn.sigmoid(y)


if __name__ == "__main__":
    def _run_case(key, n, c_in, groups, t):
        kx, kw = jax.random.split(key)
        x = jax.random.normal(kx, (n, c_in, t), dtype=jnp.float32)
        # Conv1d weight (groups, in_channels, 3); bias = 0 as in init_weights().
        conv_w = 0.1 * jax.random.normal(kw, (groups, c_in, 3), dtype=jnp.float32)
        conv_b = jnp.zeros((groups,), dtype=jnp.float32)

        out = jax.block_until_ready(weightnet_forward(x, conv_w, conv_b))
        ref = _reference(x, conv_w, conv_b)
        assert out.shape == (n, t, groups)
        assert jnp.allclose(out, ref, atol=1e-3, rtol=1e-3)

    key = jax.random.PRNGKey(0)
    k1, k2, k3 = jax.random.split(key, 3)
    _run_case(k1, 2, 4, 2, 8)    # original small config
    _run_case(k2, 16, 8, 4, 8)   # multi-row blocks
    _run_case(k3, 5, 4, 2, 8)    # awkward N -> exercises the zero-padding path

    print("KERNEL_OK")
</pallas_src>

<mosaic_0001>
module attributes {stable_mosaic.version = 11 : i64} {
  func.func @_weightnet_kernel(%arg0: i32, %arg1: memref<8x32xf32, #tpu.memory_space<vmem>>, %arg2: memref<32x16xf32, #tpu.memory_space<vmem>>, %arg3: memref<1x16xf32, #tpu.memory_space<vmem>>, %arg4: memref<8x16xf32, #tpu.memory_space<vmem>>) attributes {dimension_semantics = [#tpu.dimension_semantics<parallel>], iteration_bounds = array<i64: 1>, scalar_prefetch = 0 : i64, scratch_operands = 0 : i64, tpu.core_type = #tpu.core_type<tc>, window_params = [{transform_indices = @transform_0, window_bounds = array<i64: 8, 32>}, {pipeline_mode = #tpu.pipeline_mode<synchronous>, transform_indices = @transform_1, window_bounds = array<i64: 32, 16>}, {pipeline_mode = #tpu.pipeline_mode<synchronous>, transform_indices = @transform_2, window_bounds = array<i64: 1, 16>}, {transform_indices = @transform_3, window_bounds = array<i64: 8, 16>}]} {
    %c0 = arith.constant 0 : index
    %c0_0 = arith.constant 0 : index
    %0 = vector.load %arg1[%c0, %c0_0] : memref<8x32xf32, #tpu.memory_space<vmem>>, vector<8x32xf32>
    %c0_1 = arith.constant 0 : index
    %c0_2 = arith.constant 0 : index
    %1 = vector.load %arg2[%c0_1, %c0_2] : memref<32x16xf32, #tpu.memory_space<vmem>>, vector<32x16xf32>
    %cst = arith.constant dense<0.000000e+00> : vector<8x16xf32>
    %2 = tpu.matmul %0, %1, %cst {dimension_numbers = #tpu.dot_dimension_numbers<[1], [0], [0], [1], [0, 0, 1, 1], [], []>} : vector<8x32xf32>, vector<32x16xf32>, vector<8x16xf32> -> vector<8x16xf32>
    %c0_3 = arith.constant 0 : index
    %c0_4 = arith.constant 0 : index
    %3 = vector.load %arg3[%c0_3, %c0_4] : memref<1x16xf32, #tpu.memory_space<vmem>>, vector<1x16xf32>
    %4 = vector.broadcast %3 : vector<1x16xf32> to vector<8x16xf32>
    %5 = arith.addf %2, %4 : vector<8x16xf32>
    %6 = arith.negf %5 : vector<8x16xf32>
    %7 = math.exp %6 : vector<8x16xf32>
    %cst_5 = arith.constant 1.000000e+00 : f32
    %8 = vector.broadcast %cst_5 : f32 to vector<8x16xf32>
    %9 = arith.addf %8, %7 : vector<8x16xf32>
    %10 = arith.divf %8, %9 : vector<8x16xf32>
    %cst_6 = arith.constant 2.000000e+00 : f32
    %11 = vector.broadcast %cst_6 : f32 to vector<8x16xf32>
    %12 = arith.mulf %11, %10 : vector<8x16xf32>
    %c0_7 = arith.constant 0 : index
    %c0_8 = arith.constant 0 : index
    %13 = vector.load %arg4[%c0_7, %c0_8] : memref<8x16xf32, #tpu.memory_space<vmem>>, vector<8x16xf32>
    tpu.vector_store %arg4[%c0_7, %c0_8], %12 {strides = array<i32>} : memref<8x16xf32, #tpu.memory_space<vmem>>, vector<8x16xf32>,
    return
  }
  func.func @transform_0(%arg0: i32) -> (i32, i32) {
    %c0_i32 = arith.constant 0 : i32
    %c0_i32_0 = arith.constant 0 : i32
    return %arg0, %c0_i32 : i32, i32
  }
  func.func @transform_1(%arg0: i32) -> (i32, i32) {
    %c0_i32 = arith.constant 0 : i32
    %c0_i32_0 = arith.constant 0 : i32
    %c0_i32_1 = arith.constant 0 : i32
    return %c0_i32, %c0_i32_0 : i32, i32
  }
  func.func @transform_2(%arg0: i32) -> (i32, i32) {
    %c0_i32 = arith.constant 0 : i32
    %c0_i32_0 = arith.constant 0 : i32
    %c0_i32_1 = arith.constant 0 : i32
    return %c0_i32, %c0_i32_0 : i32, i32
  }
  func.func @transform_3(%arg0: i32) -> (i32, i32) {
    %c0_i32 = arith.constant 0 : i32
    %c0_i32_0 = arith.constant 0 : i32
    return %arg0, %c0_i32 : i32, i32
  }
}

</mosaic_0001>

<bundles_post_ra>
// kernel: tpu_custom_call.1
= control target key start
LH: loop header
LB: loop body
LE: loop exit
PB: predicated region body
PF: predicated region fallthrough
CT: control target
= control target key end

     0   :  { %v172_v1 = vmov 0.0   ;;  %vm173_vm0 = vmmov 0   ;;  %s216_s0 = inlined_call_operand.vmem [shape: f32[8,32], index: 0, kind: input, shape index: {}]   ;;  %s217_s1 = inlined_call_operand.vmem [shape: f32[32,16], index: 1, kind: input, shape index: {}]   ;;  %s218_s2 = inlined_call_operand.vmem [shape: f32[1,16], index: 2, kind: input, shape index: {}]   ;;  %s219_s3 = inlined_call_operand.hbm [shape: f32[8,16], index: 3, kind: output, shape index: {}]  }
   0x1   :  { %v19_v0 = vld [vmem:[%s217_s1 + $0x18] sm:$0xff]  ;;  %132 = vmatprep.subr.mxu0 %v172_v1  ;;  %v18_v2 = vld [vmem:[%s217_s1 + $0x10] sm:$0xff]  ;;  %140 = vmatprep.mubr.msk.f32.mxu0 %vm173_vm0, %v172_v1 }
   0x2   :  { %133 = vmatpush3.msra.mxu0 %v19_v0 }
   0x3   :  { %8 = vsyncpa [#allocation3], 0  ;;  %134 = vmatprep.subr.mxu0 %v172_v1  ;;  %v17_v3 = vld [vmem:[%s217_s1 + $0x8] sm:$0xff]  ;;  %v16_v4 = vld [vmem:[%s217_s1] sm:$0xff]  ;;  %vm27_vm1 = vcmask 261120   ;;  %s174_s1 = smov [#allocation2]  }
   0x4   :  { %135 = vmatpush3.msra.mxu0 %v18_v2  ;;  %v15_v5 = vld [vmem:[%s216_s0] sm:$0xff]  ;;  %s116_s24 = sshll.u32 %s174_s1, 4  ;;  %vm108_vm2 = vcmask 130048   ;;  %s117_s24 = int_to_ptr.vmem [resolvable:$true] %s116_s24 }
   0x5   :  { %136 = vmatprep.subr.mxu0 %v172_v1  ;;  %v124_v6 = vld [vmem:[%s218_s2] ss:$0 sm:$0xff]  ;;  %s150_s0 = scalar_lea.vmem %s117_s24, 128  ;;  %p155_p1 = scmp.lt.s32.totalorder %s117_s24, %s117_s24 }
   0x6   :  { %137 = vmatpush3.msra.mxu0 %v17_v3  ;;  %p151_p0 = scmp.ne.s32.totalorder %s117_s24, %s150_s0  ;;  %p156_p2 = scmp.lt.s32.totalorder %s150_s0, %s150_s0 }
   0x7   :  { %138 = vmatprep.subr.mxu0 %v172_v1 }
   0x8   :  { %139 = vmatpush3.msra.mxu0 %v16_v4  ;;  %p157_p3 = por %p156_p2, %p155_p1 }
   0x9   :  { %141 = vmatmul.mubr.msk.f32.vlgmr.msra.gmra.mxu0 %vm27_vm1, %v15_v5 }
   0xa   :  { %p158_p4 = pnand %p157_p3, %p151_p0 }
  0xc9   :  { %v97_v7 = vpop.f32.mrf.mxu0 }
  0xca   :  { %v98_v8 = vadd.f32 %v124_v6, %v97_v7 }
  0xcb   :  { %v142_v9 = vpop.f32.mrf.mxu0 }
  0xcc   :  { %v126_v10 = vmul.f32 -1.442695, %v98_v8 }
  0xce   :  { %146 = vpow2.f32 %v126_v10 }
  0xdb   :  { %v147_v11 = vpop.eup %146 }
  0xdc   :  { %v104_v12 = vadd.f32 1.0, %v147_v11 }
  0xde   :  { %148 = vrcp.f32 %v104_v12 }
  0xeb   :  { %v149_v13 = vpop.eup %148 }
  0xec   :  { %v107_v14 = vmul.f32 2.0, %v149_v13 }
  0xee   :  { %109 = vst.msk [vmem:[#allocation2] sm:$0xff] %vm108_vm2, %v107_v14 }
  0xef   :  { %161 = shalt.err (!%p158_p4)
}
  0xf0   :  { %119 = dma.vmem_to_hbm [thread:$0]  %s117_s24, 128, %s219_s3, [#allocation3]  }
  0xf1   :  { %170 = dma.done.wait [#allocation3], 128  }
  0xf2   :  { %171 = vsyncadd [#allocation3], 4294967168 }
  0xf3   :  { %123 = vsyncpa [#allocation3], 1 }

</bundles_post_ra>
